<compile_context>
chip_gen: v6e
topology: v6e:2x2x1
jax: 0.10.0
libtpu: 0.0.40
codegen_flags: <defaults>
</compile_context>

<pallas_src>
import math
import functools

import jax
import jax.numpy as jnp
from jax import lax
from jax.experimental import pallas as pl
from jax.experimental.pallas import tpu as pltpu


# --------------------------------------------------------------------------
# tiling helpers
# --------------------------------------------------------------------------
def _pick_row_tile(n, d, itemsize, target_rows=2048, max_tile_bytes=4 << 20,
                   prefer_min_steps=2):
    """Rows per grid step: largest multiple-of-8 divisor of n under both a row
    target and a byte budget (keeps 6x tile bytes well inside VMEM on v7x)."""
    byte_cap_rows = max(8, max_tile_bytes // max(1, d * itemsize))
    cap = min(target_rows, byte_cap_rows)
    if n < 16:                       # too small to split
        return n
    cands = [t for t in range(8, min(cap, n) + 1, 8) if n % t == 0]
    if not cands:
        # TODO(synk): masked tail tile (pl.cdiv grid) for non-divisible n.
        return n
    # Prefer >= prefer_min_steps grid steps so the "parallel" axis shards across
    # both TensorCores on v7x; otherwise take the largest fitting divisor.
    multi = [t for t in cands if n // t >= prefer_min_steps]
    return max(multi) if multi else max(cands)


def _vmem_limit_bytes(tile_rows, d, itemsize, n_streams):
    need = (2 * n_streams + 2) * tile_rows * d * itemsize   # double-buffered + slack
    return int(min(96 << 20, max(32 << 20, need)))


# --------------------------------------------------------------------------
# Kernel 1: LayerNorm over the last axis (torch .std() semantics: unbiased,
#           eps added to the std).
# --------------------------------------------------------------------------
def _layernorm_kernel(x_ref, a_ref, b_ref, o_ref, *, eps):
    x = x_ref[...].astype(jnp.float32)                       # [T, D]
    d = x.shape[-1]
    # one-pass mean / unbiased variance (sum and sum-of-squares)
    s1 = jnp.sum(x, axis=-1, keepdims=True)                  # [T, 1]
    s2 = jnp.sum(x * x, axis=-1, keepdims=True)              # [T, 1]
    mean = s1 * (1.0 / d)
    var = jnp.maximum(s2 - s1 * mean, 0.0) * (1.0 / (d - 1))
    std = jnp.sqrt(var)
    # per-row reciprocal (T divides instead of T*D); exact divide keeps this
    # portable to interpret mode (pl.reciprocal(approx=True) would push to EUP).
    inv = 1.0 / (std + eps)
    a = a_ref[...].astype(jnp.float32)
    b = b_ref[...].astype(jnp.float32)
    y = a * ((x - mean) * inv) + b
    o_ref[...] = y.astype(o_ref.dtype)


def layernorm_forward(x2d, a2, b2, *, eps=1e-6, block_rows=2048):
    """x2d: [N, D]; a2, b2: [D]. Returns [N, D]."""
    N, D = x2d.shape
    itemsize = jnp.dtype(x2d.dtype).itemsize
    T = _pick_row_tile(N, D, itemsize, target_rows=block_rows)
    a2r = a2.reshape(1, D).astype(x2d.dtype)
    b2r = b2.reshape(1, D).astype(x2d.dtype)
    cost = pl.CostEstimate(flops=10 * N * D, transcendentals=N,
                           bytes_accessed=2 * N * D * itemsize + 2 * D * itemsize)
    kernel = functools.partial(_layernorm_kernel, eps=float(eps))
    return pl.pallas_call(
        kernel,
        out_shape=jax.ShapeDtypeStruct((N, D), x2d.dtype),
        grid_spec=pltpu.PrefetchScalarGridSpec(
            num_scalar_prefetch=0,
            grid=(N // T,),
            in_specs=[
                pl.BlockSpec((T, D), lambda i: (i, 0)),   # x rows for this step
                pl.BlockSpec((1, D), lambda i: (0, 0)),   # a_2 (tiny, resident)
                pl.BlockSpec((1, D), lambda i: (0, 0)),   # b_2 (tiny, resident)
            ],
            out_specs=pl.BlockSpec((T, D), lambda i: (i, 0)),
        ),
        compiler_params=pltpu.CompilerParams(
            dimension_semantics=("parallel",),
            vmem_limit_bytes=_vmem_limit_bytes(T, D, itemsize, n_streams=2)),
        cost_estimate=cost,
    )(x2d, a2r, b2r)


# --------------------------------------------------------------------------
# Kernel 2: residual add + inverted dropout.
#   out = x + dropout(s),  keep prob (1 - p), kept values scaled by 1/(1 - p).
# Mask comes from a counter-based integer hash of (global element index, seed)
# -- pure jnp ops, so it lowers on TPU hardware and in interpret mode.
# --------------------------------------------------------------------------
def _hash_u32(x):
    # lowbias32 / splitmix-style finalizer (uint32, wrapping arithmetic).
    x = x ^ (x >> 16)
    x = x * jnp.uint32(0x7FEB352D)
    x = x ^ (x >> 15)
    x = x * jnp.uint32(0x846CA68B)
    x = x ^ (x >> 16)
    return x


def _residual_dropout_kernel(seed_ref, x_ref, s_ref, o_ref, *, p):
    x = x_ref[...].astype(jnp.float32)
    s = s_ref[...].astype(jnp.float32)
    if p > 0.0:  # static (trace-time) branch
        T, D = s.shape
        row = lax.broadcasted_iota(jnp.int32, (T, D), 0)
        col = lax.broadcasted_iota(jnp.int32, (T, D), 1)
        base_row = pl.program_id(0) * T
        idx = ((base_row + row) * D + col).astype(jnp.uint32)
        # mix the seed with a large odd constant so adjacent seeds give
        # decorrelated streams across calls / layers.
        seed_u = seed_ref[0].astype(jnp.uint32) * jnp.uint32(0x9E3779B1)
        h = _hash_u32(idx ^ seed_u)
        r = (h >> 1).astype(jnp.int32)                      # uniform in [0, 2^31)
        thresh = jnp.int32(min(int(round((1.0 - p) * 2147483648.0)), 2147483647))
        scale = jnp.float32(1.0 / (1.0 - p))
        s = jnp.where(r < thresh, s * scale, jnp.float32(0.0))
    o_ref[...] = (x + s).astype(o_ref.dtype)


def residual_dropout_forward(x2d, s2d, *, p=0.0, seed=0, block_rows=2048):
    """x2d, s2d: [N, D]. Returns x2d + dropout(s2d)."""
    N, D = x2d.shape
    itemsize = jnp.dtype(x2d.dtype).itemsize
    T = _pick_row_tile(N, D, itemsize, target_rows=block_rows)
    seed_arr = jnp.asarray([int(seed) & 0x7FFFFFFF], dtype=jnp.int32)
    cost = pl.CostEstimate(flops=16 * N * D, transcendentals=0,
                           bytes_accessed=3 * N * D * itemsize)
    kernel = functools.partial(_residual_dropout_kernel, p=float(p))
    return pl.pallas_call(
        kernel,
        out_shape=jax.ShapeDtypeStruct((N, D), x2d.dtype),
        grid_spec=pltpu.PrefetchScalarGridSpec(
            num_scalar_prefetch=1,                      # seed -> SMEM
            grid=(N // T,),
            in_specs=[
                pl.BlockSpec((T, D), lambda i, seed_ref: (i, 0)),   # x (residual)
                pl.BlockSpec((T, D), lambda i, seed_ref: (i, 0)),   # sublayer output
            ],
            out_specs=pl.BlockSpec((T, D), lambda i, seed_ref: (i, 0)),
        ),
        compiler_params=pltpu.CompilerParams(
            dimension_semantics=("parallel",),
            vmem_limit_bytes=_vmem_limit_bytes(T, D, itemsize, n_streams=3)),
        cost_estimate=cost,
    )(seed_arr, x2d, s2d)


# --------------------------------------------------------------------------
# SublayerConnection forward:  x + dropout(sublayer(LayerNorm(x)))
# --------------------------------------------------------------------------
def sublayer_connection_forward(x, a2, b2, sublayer, *, dropout_p=0.0, seed=0,
                                training=True, eps=1e-6, block_rows=2048):
    """x: [B, S, D]; a2, b2: [D]; sublayer: arbitrary JAX callable on [B, S, D]."""
    B, S, D = x.shape
    x2 = x.reshape(B * S, D)
    normed = layernorm_forward(x2, a2, b2, eps=eps, block_rows=block_rows)
    # TODO(synk): for a known-matmul sublayer, fuse LN as prologue and
    # residual+dropout as the matmul epilogue to save 2*N*D HBM bytes; an
    # arbitrary callable must run as plain JAX between the two kernels.
    s = sublayer(normed.reshape(B, S, D)).reshape(B * S, D)
    p = float(dropout_p) if training else 0.0
    out = residual_dropout_forward(x2, s, p=p, seed=seed, block_rows=block_rows)
    return out.reshape(B, S, D)


# --------------------------------------------------------------------------
# self-test
# --------------------------------------------------------------------------
def _layernorm_ref(x, a2, b2, eps=1e-6):
    mean = x.mean(-1, keepdims=True)
    std = jnp.std(x, axis=-1, ddof=1, keepdims=True)   # torch .std() is unbiased
    return a2 * (x - mean) / (std + eps) + b2


if __name__ == "__main__":
    B, S, D = 2, 8, 128           # small, lane-dense (D multiple of 128)
    key = jax.random.PRNGKey(0)
    kx, ka, kb, kw = jax.random.split(key, 4)

    x = jax.random.normal(kx, (B, S, D), dtype=jnp.float32)
    a2 = 1.0 + 0.1 * jax.random.normal(ka, (D,), dtype=jnp.float32)
    b2 = 0.1 * jax.random.normal(kb, (D,), dtype=jnp.float32)
    W = jax.random.normal(kw, (D, D), dtype=jnp.float32) / math.sqrt(D)
    sublayer = lambda y: jnp.tanh(y @ W)

    # 1) LayerNorm kernel alone vs reference.
    ln_out = layernorm_forward(x.reshape(B * S, D), a2, b2).reshape(B, S, D)
    ln_out = jax.block_until_ready(ln_out)
    ln_ref = _layernorm_ref(x, a2, b2)
    assert jnp.allclose(ln_out, ln_ref, atol=1e-4, rtol=1e-4)

    # 2) Full SublayerConnection with dropout disabled -> exact reference check.
    out = sublayer_connection_forward(x, a2, b2, sublayer, dropout_p=0.0)
    out = jax.block_until_ready(out)
    ref = x + sublayer(_layernorm_ref(x, a2, b2))
    assert out.shape == (B, S, D)
    assert jnp.allclose(out, ref, atol=1e-4, rtol=1e-4)

    # 3) Training path with dropout p=0.1: must run; some (not all) elements dropped.
    out_d = sublayer_connection_forward(x, a2, b2, sublayer,
                                        dropout_p=0.1, seed=1234, training=True)
    out_d = jax.block_until_ready(out_d)
    assert out_d.shape == (B, S, D)
    assert bool(jnp.all(jnp.isfinite(out_d)))
    dropped = int(jnp.sum(jnp.abs(out_d - x) < 1e-12))   # dropped elems leave x untouched
    assert 0 < dropped < out_d.size

    print("KERNEL_OK")
</pallas_src>

<mosaic_0001>
module attributes {stable_mosaic.version = 11 : i64} {
  func.func @_layernorm_kernel(%arg0: i32, %arg1: memref<8x128xf32, #tpu.memory_space<vmem>>, %arg2: memref<1x128xf32, #tpu.memory_space<vmem>>, %arg3: memref<1x128xf32, #tpu.memory_space<vmem>>, %arg4: memref<8x128xf32, #tpu.memory_space<vmem>>) attributes {dimension_semantics = [#tpu.dimension_semantics<parallel>], iteration_bounds = array<i64: 2>, scalar_prefetch = 0 : i64, scratch_operands = 0 : i64, tpu.core_type = #tpu.core_type<tc>, window_params = [{transform_indices = @transform_0, window_bounds = array<i64: 8, 128>}, {pipeline_mode = #tpu.pipeline_mode<synchronous>, transform_indices = @transform_1, window_bounds = array<i64: 1, 128>}, {pipeline_mode = #tpu.pipeline_mode<synchronous>, transform_indices = @transform_2, window_bounds = array<i64: 1, 128>}, {transform_indices = @transform_3, window_bounds = array<i64: 8, 128>}]} {
    %c0 = arith.constant 0 : index
    %c0_0 = arith.constant 0 : index
    %0 = vector.load %arg1[%c0, %c0_0] : memref<8x128xf32, #tpu.memory_space<vmem>>, vector<8x128xf32>
    %cst = arith.constant dense<0.000000e+00> : vector<8xf32>
    %1 = vector.multi_reduction <add>, %0, %cst [1] : vector<8x128xf32> to vector<8xf32>
    %2 = vector.shape_cast %1 : vector<8xf32> to vector<8x1xf32>
    %3 = arith.mulf %0, %0 : vector<8x128xf32>
    %cst_1 = arith.constant dense<0.000000e+00> : vector<8xf32>
    %4 = vector.multi_reduction <add>, %3, %cst_1 [1] : vector<8x128xf32> to vector<8xf32>
    %5 = vector.shape_cast %4 : vector<8xf32> to vector<8x1xf32>
    %cst_2 = arith.constant 7.812500e-03 : f32
    %6 = vector.broadcast %cst_2 : f32 to vector<8x1xf32>
    %7 = arith.mulf %2, %6 : vector<8x1xf32>
    %8 = arith.mulf %2, %7 : vector<8x1xf32>
    %9 = arith.subf %5, %8 : vector<8x1xf32>
    %cst_3 = arith.constant 0.000000e+00 : f32
    %10 = vector.broadcast %cst_3 : f32 to vector<8x1xf32>
    %11 = arith.maximumf %9, %10 : vector<8x1xf32>
    %cst_4 = arith.constant 0.00787401571 : f32
    %12 = vector.broadcast %cst_4 : f32 to vector<8x1xf32>
    %13 = arith.mulf %11, %12 : vector<8x1xf32>
    %14 = math.sqrt %13 : vector<8x1xf32>
    %cst_5 = arith.constant 9.99999997E-7 : f32
    %15 = vector.broadcast %cst_5 : f32 to vector<8x1xf32>
    %16 = arith.addf %14, %15 : vector<8x1xf32>
    %cst_6 = arith.constant 1.000000e+00 : f32
    %17 = vector.broadcast %cst_6 : f32 to vector<8x1xf32>
    %18 = arith.divf %17, %16 : vector<8x1xf32>
    %c0_7 = arith.constant 0 : index
    %c0_8 = arith.constant 0 : index
    %19 = vector.load %arg2[%c0_7, %c0_8] : memref<1x128xf32, #tpu.memory_space<vmem>>, vector<1x128xf32>
    %c0_9 = arith.constant 0 : index
    %c0_10 = arith.constant 0 : index
    %20 = vector.load %arg3[%c0_9, %c0_10] : memref<1x128xf32, #tpu.memory_space<vmem>>, vector<1x128xf32>
    %21 = vector.broadcast %7 : vector<8x1xf32> to vector<8x128xf32>
    %22 = arith.subf %0, %21 : vector<8x128xf32>
    %23 = vector.broadcast %18 : vector<8x1xf32> to vector<8x128xf32>
    %24 = arith.mulf %22, %23 : vector<8x128xf32>
    %25 = vector.broadcast %19 : vector<1x128xf32> to vector<8x128xf32>
    %26 = arith.mulf %25, %24 : vector<8x128xf32>
    %27 = vector.broadcast %20 : vector<1x128xf32> to vector<8x128xf32>
    %28 = arith.addf %26, %27 : vector<8x128xf32>
    %c0_11 = arith.constant 0 : index
    %c0_12 = arith.constant 0 : index
    %29 = vector.load %arg4[%c0_11, %c0_12] : memref<8x128xf32, #tpu.memory_space<vmem>>, vector<8x128xf32>
    tpu.vector_store %arg4[%c0_11, %c0_12], %28 {strides = array<i32>} : memref<8x128xf32, #tpu.memory_space<vmem>>, vector<8x128xf32>,
    return
  }
  func.func @transform_0(%arg0: i32) -> (i32, i32) {
    %c0_i32 = arith.constant 0 : i32
    %c0_i32_0 = arith.constant 0 : i32
    return %arg0, %c0_i32 : i32, i32
  }
  func.func @transform_1(%arg0: i32) -> (i32, i32) {
    %c0_i32 = arith.constant 0 : i32
    %c0_i32_0 = arith.constant 0 : i32
    %c0_i32_1 = arith.constant 0 : i32
    return %c0_i32, %c0_i32_0 : i32, i32
  }
  func.func @transform_2(%arg0: i32) -> (i32, i32) {
    %c0_i32 = arith.constant 0 : i32
    %c0_i32_0 = arith.constant 0 : i32
    %c0_i32_1 = arith.constant 0 : i32
    return %c0_i32, %c0_i32_0 : i32, i32
  }
  func.func @transform_3(%arg0: i32) -> (i32, i32) {
    %c0_i32 = arith.constant 0 : i32
    %c0_i32_0 = arith.constant 0 : i32
    return %arg0, %c0_i32 : i32, i32
  }
}

</mosaic_0001>

<bundles_post_ra>
// kernel: tpu_custom_call.1
= control target key start
LH: loop header
LB: loop body
LE: loop exit
PB: predicated region body
PF: predicated region fallthrough
CT: control target
= control target key end

     0   :  { %8 = vsyncpa [#allocation3], 0  ;;  %s641_s0 = inlined_call_operand.hbm [shape: f32[16,128], index: 0, kind: input, shape index: {}]   ;;  %s642_s1 = inlined_call_operand.vmem [shape: f32[1,128], index: 1, kind: input, shape index: {}]   ;;  %s643_s2 = inlined_call_operand.vmem [shape: f32[1,128], index: 2, kind: input, shape index: {}]   ;;  %s644_s3 = inlined_call_operand.hbm [shape: f32[16,128], index: 3, kind: output, shape index: {}]  }
   0x1   :  { %10 = vsyncpa [#allocation3 + $0x1], 0 }
   0x2   :  { %11 = vsyncpa [#allocation4], 0 }
   0x3   :  { %13 = vsyncpa [#allocation4 + $0x1], 0  ;;  %s490_s12 = smov 0   ;;  %s492_s13 = smov 0  }
   0x4   :  { %s494_s14 = smov 0   ;;  %s496_s15 = smov 0  }
   0x5 LB: > { %s511_s16 = sadd.s32 4294967295, %s466_s15   ;;  %s310_s17 = sadd.s32 4294967294, %s466_s15   ;;  %s466_s15 = sphi %s496_s15, %s661_s15   ;;  %s462_s14 = sphi %s494_s14, %s660_s14   ;;  %s458_s13 = sphi %s492_s13, %s659_s13   ;;  %s454_s12 = sphi %s490_s12, %s658_s12  }
   0x6   : > { %s515_s18 = sadd.s32 1, %s466_s15   ;;  %s26_s19 = sadd.s32 1, %s462_s14 }
   0x7   : > { %s23_s20 = ssub.s32 %s466_s15, %s515_s18  ;;  %p33_p0 = scmp.ne.s32.totalorder %s462_s14, %s458_s13 }
   0x8   : > { %p24_p1 = scmp.eq.s32.totalorder %s23_s20, 0  ;;  %p34_p2 = scmp.eq.s32.totalorder %s466_s15, 0 }
   0x9   : > { %p39_p3 = scmp.ne.s32.totalorder %s458_s13, %s454_s12  ;;  %p40_p4 = scmp.eq.s32.totalorder %s511_s16, 0 }
   0xa   : > { %s527_s21 = scalar_select %p24_p1, %s462_s14, %s26_s19  }
   0xb   : > { %p529_p5 = por %p34_p2, %p33_p0  ;;  %p533_p6 = por %p40_p4, %p39_p3 }
   0xc   : > { %p105_p7 = scmp.eq.s32.totalorder %s511_s16, 1  ;;  %p111_p8 = scmp.eq.s32.totalorder %s310_s17, 1 }
   0xd   : > { %s648_s23 = scalar_select %p533_p6, 1, 0 }
   0xe   : > { %p336_p10 = scmp.lt.s32.totalorder %s466_s15, 2  ;;  %p540_p11 = por %p105_p7, %p33_p0 }
   0xf   : > { %p544_p12 = por %p111_p8, %p39_p3  ;;  %s137_s26 = sand.u32 1, %s462_s14  }
  0x10   : > { %s649_s24 = scalar_select %p540_p11, 1, 0 }
  0x11   : > { %s650_s25 = scalar_select %p544_p12, 1, 0 }
  0x12   : > { %s314_s27 = sshll.u32 %s466_s15, 7  ;;  %s313_s28 = sshll.u32 %s137_s26, 3 }
  0x13   : > { %s553_s4 = scalar_lea.hbm %s641_s0, %s314_s27  ;;  %s141_s5 = scalar_lea.vmem [#allocation2], %s313_s28 }
  0x14   : > { %s148_s6 = sshll.u32 %s141_s5, 4  ;;  %p557_p13 = pnand %p336_p10, %p529_p5  ;;  %s561_s6 = int_to_ptr.vmem [resolvable:$true] %s148_s6 }
  0x15   : > { %s138_s8 = scalar_lea.sflag [#allocation3], %s137_s26  ;;  %s374_s9 = scalar_lea.hbm %s553_s4, 128 }
  0x16   : > { %p375_p2 = scmp.ne.s32.totalorder %s553_s4, %s374_s9  ;;  %p376_p3 = pneg %p557_p13 }
  0x17   : > { %s379_s17 = scalar_lea.hbm %s641_s0, 256  ;;  %p380_p5 = scmp.lt.s32.totalorder %s553_s4, %s641_s0 }
  0x18   : > { %p377_p4 = pnand %p376_p3, %p375_p2  ;;  %p381_p8 = scmp.lt.s32.totalorder %s379_s17, %s374_s9 }
  0x1a   : > { %p378_p7 = pneg %p377_p4  ;;  %p382_p10 = por %p381_p8, %p380_p5 }
  0x1c   : > { %p383_p9 = pnand %p382_p10, %p378_p7 }
  0x1e   : > { %386 = shalt.err (!%p383_p9)
}
  0x1f   : > { %s387_s22 = scalar_lea.vmem %s561_s6, 128  ;;  %s468_s26 = smov [#allocation2]  }
  0x20   : > { %p388_p0 = scmp.ne.s32.totalorder %s561_s6, %s387_s22  ;;  %s392_s27 = sshll.u32 %s468_s26, 4  ;;  %s393_s27 = int_to_ptr.vmem [resolvable:$false] %s392_s27 }
  0x21   : > { %s394_s28 = scalar_lea.vmem %s393_s27, 256  ;;  %p395_p4 = scmp.lt.s32.totalorder %s561_s6, %s393_s27 }
  0x22   : > { %p390_p1 = pnand %p388_p0, %p376_p3  ;;  %p396_p12 = scmp.lt.s32.totalorder %s394_s28, %s387_s22 }
  0x24   : > { %p391_p2 = pneg %p390_p1  ;;  %p397_p11 = por %p396_p12, %p395_p4 }
  0x26   : > { %p398_p6 = pnand %p397_p11, %p391_p2 }
  0x28   : > { %401 = shalt.err (!%p398_p6)
}
  0x29   : > { %331 = dma.hbm_to_vmem [thread:$0]  (!%p557_p13), %s553_s4, 128, %s561_s6, %s138_s8  }
  0x2a   : > { %p652_p9 = scmp.lt.s32.totalorder %s466_s15, 3  ;;  %p653_p7 = scmp.ge.s32.totalorder %s466_s15, 1 }
  0x2c   : > { %p154_p0 = pnand %p653_p7, %p652_p9 }
  0x2d   : > { %s588_s29 = sand.u32 (!%p154_p0), 1, %s458_s13   ;;  %p654_p6 = scmp.ne.s32.totalorder (!%p154_p0), %s648_s23, 0 }
  0x2e   : > { %157 = sbr.rel (%p154_p0) target bundleno = 254 (0xfe), region = 32  ;;  %s316_s30 = sshll.u32 (!%p154_p0), %s588_s29, 3 }
  0x2f   : > { %s160_s5 = scalar_lea.sflag (!%p154_p0), [#allocation3], %s588_s29  ;;  %s163_s7 = scalar_lea.vmem (!%p154_p0), [#allocation2], %s316_s30 }
  0x33   : > { %445 = dma.done.wait (%p654_p6), %s160_s5, 128  }
  0x34   : > { %447 = vsyncadd (%p654_p6), %s160_s5, 4294967168  ;;  %v186_v0 = vld [vmem:[%s163_s7] sm:$0xff]  ;;  %s321_s9 = sshll.u32 %s511_s16, 7  ;;  %s185_s10 = scalar_lea.vmem [#allocation5], %s316_s30 }
  0x35   : > { %187 = vadd.xlane.f32.xlu0 %v186_v0  ;;  %v189_v1 = vmul.f32 %v186_v0, %v186_v0  ;;  %v318_v17 = vld [vmem:[%s642_s1] ss:$0 sm:$0xff]  ;;  %s240_s11 = sshll.u32 %s185_s10, 4  ;;  %s238_s20 = scalar_lea.hbm %s644_s3, %s321_s9  ;;  %s241_s11 = int_to_ptr.vmem [resolvable:$true] %s240_s11 }
  0x36   : > { %v319_v19 = vld [vmem:[%s643_s2] ss:$0 sm:$0xff]  ;;  %s227_s22 = scalar_lea.sflag [#allocation4], %s588_s29  ;;  %s402_s26 = scalar_lea.vmem %s241_s11, 128 }
  0x37   : > { %p403_p11 = scmp.ne.s32.totalorder %s241_s11, %s402_s26  ;;  %p655_p12 = scmp.ne.s32.totalorder %s649_s24, 0 }
  0x38   : > { %s469_s27 = smov [#allocation5]  }
  0x39   : > { %190 = vadd.xlane.f32.xlu0 %v189_v1  ;;  %p404_p13 = pnand %p403_p11, %p655_p12  ;;  %s406_s28 = sshll.u32 %s469_s27, 4  ;;  %s407_s28 = int_to_ptr.vmem [resolvable:$false] %s406_s28 }
  0x3a   : > { %s408_s16 = scalar_lea.vmem %s407_s28, 256  ;;  %p409_p3 = scmp.lt.s32.totalorder %s241_s11, %s407_s28 }
  0x3b   : > { %p405_p1 = pneg %p404_p13  ;;  %p410_p5 = scmp.lt.s32.totalorder %s408_s16, %s402_s26 }
  0x3d   : > { %p411_p8 = por %p410_p5, %p409_p3 }
  0x3f   : > { %p412_p10 = pnand %p411_p8, %p405_p1 }
  0xbe   : > { %v188_v2 = vpop.xlane.xlu0 %187 }
  0xbf   : > { %v192_v3 = vmul.f32 0.0078125, %v188_v2 }
  0xc1   : > { %v193_v4 = vmul.f32 %v192_v3, %v188_v2  ;;  %v209_v15 = vsub.f32 %v186_v0, %v192_v3 }
  0xc2   : > { %v191_v5 = vpop.xlane.xlu0 %190 }
  0xc3   : > { %v194_v6 = vsub.f32 %v191_v5, %v193_v4 }
  0xc5   : > { %v195_v7 = vmax.f32 %v194_v6, 0.0 }
  0xc7   : > { %v196_v8 = vmul.f32 0.007874016, %v195_v7 }
  0xc9   : > { %370 = vrsqrt.f32 %v196_v8  ;;  %vm199_vm0 = vcmp.eq.f32.partialorder %v196_v8, inf  ;;  %v202_v11 = vand.u32 2147483648, %v196_v8  ;;  %vm201_vm1 = vcmp.eq.f32.partialorder %v196_v8, 0.0 }
  0xd6   : > { %v371_v9 = vpop.eup %370 }
  0xd7   : > { %v198_v10 = vmul.f32 %v371_v9, %v196_v8 }
  0xd9   : > { %v200_v12 = vsel %vm199_vm0, %v196_v8, %v198_v10 }
  0xda   : > { %v203_v13 = vsel %vm201_vm1, %v202_v11, %v200_v12 }
  0xdb   : > { %v204_v14 = vadd.f32 1e-06, %v203_v13 }
  0xdd   : > { %372 = vrcp.f32 %v204_v14 }
  0xea   : > { %v373_v16 = vpop.eup %372 }
  0xeb   : > { %v210_v18 = vmul.f32 %v373_v16, %v209_v15 }
  0xed   : > { %v217_v20 = vmul.f32 %v318_v17, %v210_v18 }
  0xef   : > { %v224_v21 = vadd.f32 %v319_v19, %v217_v20 }
  0xf1   : > { %225 = vst [vmem:[%s185_s10] sm:$0xff] %v224_v21 }
  0xf2   : > { %415 = shalt.err (!%p412_p10)
}
  0xf3   : > { %s416_s30 = scalar_lea.hbm %s238_s20, 128  ;;  %s420_s7 = scalar_lea.hbm %s644_s3, 256 }
  0xf4   : > { %p417_p2 = scmp.ne.s32.totalorder %s238_s20, %s416_s30  ;;  %p421_p7 = scmp.lt.s32.totalorder %s238_s20, %s644_s3 }
  0xf5   : > { %p422_p0 = scmp.lt.s32.totalorder %s420_s7, %s416_s30 }
  0xf6   : > { %p418_p4 = pnand %p417_p2, %p655_p12 }
  0xf7   : > { %p423_p6 = por %p422_p0, %p421_p7 }
  0xf8   : > { %p419_p9 = pneg %p418_p4 }
  0xfa   : > { %p424_p11 = pnand %p423_p6, %p419_p9 }
  0xfc   : > { %427 = shalt.err (!%p424_p11)
}
  0xfd   : > { %326 = dma.vmem_to_hbm [thread:$0]  (%p655_p12), %s241_s11, 128, %s238_s20, %s227_s22  }
  0xfe PF: > { %s252_s6 = sand.u32 1, %s454_s12   ;;  %p656_p13 = scmp.ne.s32.totalorder %s650_s25, 0 }
  0xff   : > { %p657_p1 = scmp.ge.s32.totalorder %s466_s15, 2  ;;  %s253_s8 = scalar_lea.sflag [#allocation4], %s252_s6 }
 0x101   : > { %p333_p3 = pnand %p657_p1, %p656_p13 }
 0x103   : > { %p334_p5 = pneg %p333_p3 }
 0x105   : > { %449 = dma.done.wait (%p334_p5), %s253_s8, 128  }
 0x106   : > { %451 = vsyncadd (%p334_p5), %s253_s8, 4294967168  ;;  %p16_p8 = scmp.ge.s32.totalorder %s515_s18, 4   ;;  %s658_s12 = smov %s458_s13 }
 0x107   : > { %s659_s13 = smov %s462_s14  ;;  %s660_s14 = smov %s527_s21 }
 0x108   : > { %s661_s15 = smov %s515_s18  ;;  %18 = sbr.rel (!%p16_p8) target bundleno = 5 (0x5), region = 77 }
 0x10d   :  { %258 = vsyncpa [#allocation3], 1 }
 0x10e   :  { %260 = vsyncpa [#allocation3 + $0x1], 1 }
 0x10f   :  { %261 = vsyncpa [#allocation4], 1 }
 0x110   :  { %263 = vsyncpa [#allocation4 + $0x1], 1 }

</bundles_post_ra>
